<compile_context>
chip_gen: v7x
topology: tpu7x:2x2x1
jax: 0.10.0
libtpu: 0.0.40
codegen_flags: <defaults>
</compile_context>

<pallas_src>
import functools

import jax
import jax.numpy as jnp
from jax.experimental import pallas as pl
from jax.experimental.pallas import tpu as pltpu

BN_EPS = 1e-5


def _round_up(a, b):
    return (a + b - 1) // b * b


def _vmem_limit_bytes():
    """Generation-aware VMEM budget: ~3/4 of per-TC VMEM, capped at 100 MiB."""
    try:
        cap = pltpu.get_tpu_info().vmem_capacity_bytes
        if cap:
            return int(min(cap * 3 // 4, 100 * 1024 * 1024))
    except Exception:
        pass
    return 48 * 1024 * 1024  # safe default: fits v7x's 64 MiB/TC; v5e/v6e have 128 MiB


def _choose_row_block(h_out, w_pad, c_in, c_pad, k, in_bytes, store_bytes, budget):
    """Pick (TR, W_pack, H_al, T): TR%8==0 and W_pack%16==0 keep TR*W_pack % 128 == 0."""
    w_pack = _round_up(max(w_pad, 16), 16)
    h_al8 = _round_up(h_out, 8)

    def blk_bytes(tr):
        lhalo = (tr + k) * w_pack
        return (2 * c_in * lhalo * in_bytes            # double-buffered haloed input block
                + 2 * c_pad * tr * w_pack * store_bytes  # double-buffered y tile
                + c_pad * tr * w_pack * 4)             # f32 accumulator value

    tr = min(h_al8, max(8, (2048 // w_pack) // 8 * 8))  # target ~2048-lane tiles
    while tr > 8 and blk_bytes(tr) > budget:
        tr -= 8
    # TODO(synk): add a C_in grid axis (channel-chunk accumulation) for the rare case where
    # a single TR=8 row block with huge C_in still exceeds the VMEM budget.
    h_al = _round_up(h_out, tr)
    return tr, w_pack, h_al, h_al // tr


def _fused_conv_stats_kernel(x_ref, w_ref, mask_ref, y_ref, stats_ref, *, k, w_pack, trw):
    """One (image, row-block) grid step: k*k shifted MXU matmuls + masked BN partials.

    x_ref    : (1, 1, C_in, (TR+k)*W_pack)  haloed input rows, row-major flattened
    w_ref    : (k*k, Cp, C_in)              per-tap conv weights
    mask_ref : (1, 1, TR*W_pack)            1.0 on valid output positions, else 0.0
    y_ref    : (1, 1, Cp, TR*W_pack)        conv output tile (store dtype)
    stats_ref: (1, 1, Cp, 2)                merged [masked sum, masked centered sumsq]
    """
    acc = None
    for tap in range(k * k):
        kh, kw = divmod(tap, k)
        d = kh * w_pack + kw
        xs = x_ref[0, 0, :, d:d + trw]                       # (C_in, TRW), static slice
        part = jnp.dot(w_ref[tap], xs, preferred_element_type=jnp.float32)
        acc = part if acc is None else acc + part            # (Cp, TRW) f32 accumulation

    # Store y (possibly bf16); statistics below are taken from the f32 accumulator.
    y_ref[0, 0] = acc.astype(y_ref.dtype)

    mask = mask_ref[0]                                       # (1, TRW)
    cnt = jnp.sum(mask, axis=1, keepdims=True)               # (1, 1) valid count
    s = jnp.sum(acc * mask, axis=1, keepdims=True)           # (Cp, 1)
    mu = s / cnt
    dev = (acc - mu) * mask
    m2 = jnp.sum(dev * dev, axis=1, keepdims=True)           # (Cp, 1)
    stats_ref[0, 0] = jnp.concatenate([s, m2], axis=1)       # single merged stat store


def _bn_apply_kernel(y_ref, scale_ref, shift_ref, o_ref):
    """Folded BN affine: out = y * scale + shift (per output channel), aliased onto y."""
    y = y_ref[0].astype(jnp.float32)                         # (TJ, Cp, TRW)
    o_ref[0] = (y * scale_ref[...] + shift_ref[...]).astype(o_ref.dtype)


@functools.partial(jax.jit, static_argnames=("k", "p", "compute_dtype"))
def conv_block_forward(x_nchw, conv_w, conv_b, bn_gamma, bn_beta, *, k, p,
                       compute_dtype=jnp.bfloat16):
    """ConvBlock forward: BatchNorm2d(Conv2d(x)), training-mode batch statistics.

    x_nchw : (N, C_in, H, W)
    conv_w : (C_out, C_in, k, k)   (PyTorch layout)
    conv_b : (C_out,)  -- accepted for interface parity; it cancels under BN.
    bn_gamma, bn_beta : (C_out,)
    returns (N, C_out, H_out, W_out) float32
    """
    del conv_b  # cancels exactly under training-mode BatchNorm

    n, c_in, h, w = x_nchw.shape
    c_out = conv_w.shape[0]
    h_out = h + 2 * p - k + 1
    w_out = w + 2 * p - k + 1
    w_pad = w + 2 * p
    # MXU-aware channel padding: tiny C_out stays sublane-aligned (avoids 16x y inflation),
    # large C_out fills the MXU rows.
    c_pad = _round_up(c_out, 128) if c_out >= 64 else _round_up(c_out, 8)

    in_bytes = jnp.dtype(compute_dtype).itemsize
    store_dtype = compute_dtype          # y intermediate stored in compute dtype (bf16 prod)
    store_bytes = jnp.dtype(store_dtype).itemsize

    vmem_limit = _vmem_limit_bytes()
    tr, w_pack, h_al, t = _choose_row_block(
        h_out, w_pad, c_in, c_pad, k, in_bytes, store_bytes, budget=(vmem_limit * 3) // 5)
    trw = tr * w_pack
    lhalo = (tr + k) * w_pack
    h_pack = h_al + k

    # ---- input prep: cast to compute dtype FIRST, then pad + per-row-block halo
    #      duplication (~(TR+k)/TR x input bytes -- this replaces the k^2 im2col expansion).
    x_p = jnp.pad(x_nchw.astype(compute_dtype),
                  ((0, 0), (0, 0), (p, h_pack - h - p), (p, w_pack - w - p)))
    x_halo = jnp.stack([x_p[:, :, j * tr: j * tr + tr + k, :] for j in range(t)], axis=1)
    x_halo = x_halo.reshape(n, t, c_in, lhalo)

    # ---- per-tap weights (k*k, Cp, C_in); tap order matches divmod(tap, k) in the kernel.
    w_taps = jnp.transpose(conv_w.astype(jnp.float32), (2, 3, 0, 1)).reshape(k * k, c_out, c_in)
    if c_pad != c_out:
        w_taps = jnp.pad(w_taps, ((0, 0), (0, c_pad - c_out), (0, 0)))
    w_taps = w_taps.astype(compute_dtype)
    # NOTE: the constant-index weight block is fetched once; for very large Cp*C_in one
    # could also drop its second pipeline buffer (pl.Buffered(1)) to save VMEM on v7x.

    # ---- validity mask (row < H_out, col < W_out) built once in the wrapper; keeps the
    #      batch statistics exact on padded tiles without in-kernel index math.
    rows = jnp.arange(t)[:, None] * tr + jnp.arange(tr)[None, :]            # (T, TR)
    valid = (rows[:, :, None] < h_out) & (jnp.arange(w_pack)[None, None, :] < w_out)
    mask = valid.astype(jnp.float32).reshape(t, 1, trw)

    cparams = pltpu.CompilerParams(
        dimension_semantics=("parallel", "parallel"),
        vmem_limit_bytes=vmem_limit,
    )

    # ---------------- pass 1: fused conv (k*k shifted matmuls) + masked BN partials -------
    kern1 = functools.partial(_fused_conv_stats_kernel, k=k, w_pack=w_pack, trw=trw)
    cost1 = pl.CostEstimate(
        flops=2 * n * t * (k * k) * c_pad * c_in * trw,
        transcendentals=0,
        bytes_accessed=(n * t * c_in * lhalo * in_bytes + k * k * c_pad * c_in * in_bytes
                        + t * trw * 4 + n * t * c_pad * trw * store_bytes
                        + n * t * c_pad * 2 * 4),
    )
    y, stats = pl.pallas_call(
        kern1,
        out_shape=(
            jax.ShapeDtypeStruct((n, t, c_pad, trw), store_dtype),
            jax.ShapeDtypeStruct((n, t, c_pad, 2), jnp.float32),
        ),
        grid=(n, t),
        in_specs=[
            pl.BlockSpec((1, 1, c_in, lhalo), lambda i, j: (i, j, 0, 0)),
            pl.BlockSpec((k * k, c_pad, c_in), lambda i, j: (0, 0, 0)),
            pl.BlockSpec((1, 1, trw), lambda i, j: (j, 0, 0)),
        ],
        out_specs=(
            pl.BlockSpec((1, 1, c_pad, trw), lambda i, j: (i, j, 0, 0)),
            pl.BlockSpec((1, 1, c_pad, 2), lambda i, j: (i, j, 0, 0)),
        ),
        compiler_params=cparams,
        cost_estimate=cost1,
    )(x_halo, w_taps, mask)

    # ---- merge per-tile partials: stable parallel-variance merge with true valid counts.
    s_tiles = stats[..., 0]                                   # (N, T, Cp)
    m2_tiles = stats[..., 1]
    counts = jnp.sum(mask, axis=(1, 2))                       # (T,) valid elems per tile
    m_total = float(n * h_out * w_out)
    mean = jnp.sum(s_tiles, axis=(0, 1)) / m_total            # (Cp,)
    tile_mean = s_tiles / counts[None, :, None]
    var = (jnp.sum(m2_tiles, axis=(0, 1))
           + jnp.sum(counts[None, :, None] * (tile_mean - mean) ** 2, axis=(0, 1))) / m_total
    var = jnp.maximum(var, 0.0)
    inv_std = jax.lax.rsqrt(var + BN_EPS)

    gamma = bn_gamma.astype(jnp.float32)
    beta = bn_beta.astype(jnp.float32)
    if c_pad != c_out:
        gamma = jnp.pad(gamma, (0, c_pad - c_out))
        beta = jnp.pad(beta, (0, c_pad - c_out))
    scale = (gamma * inv_std).reshape(c_pad, 1)
    shift = (beta - mean * gamma * inv_std).reshape(c_pad, 1)

    # ---------------- pass 2: folded BN affine, output aliased onto y, larger blocks ------
    tj = 1
    p2_budget = (vmem_limit * 2) // 5
    for cand in range(1, t + 1):
        if t % cand == 0 and 4 * cand * c_pad * trw * store_bytes <= p2_budget:
            tj = cand
    cost2 = pl.CostEstimate(
        flops=2 * n * t * c_pad * trw,
        transcendentals=0,
        bytes_accessed=2 * n * t * c_pad * trw * store_bytes + 2 * c_pad * 4,
    )
    y_bn = pl.pallas_call(
        _bn_apply_kernel,
        out_shape=jax.ShapeDtypeStruct((n, t, c_pad, trw), store_dtype),
        grid=(n, t // tj),
        in_specs=[
            pl.BlockSpec((1, tj, c_pad, trw), lambda i, j: (i, j, 0, 0)),
            pl.BlockSpec((c_pad, 1), lambda i, j: (0, 0)),
            pl.BlockSpec((c_pad, 1), lambda i, j: (0, 0)),
        ],
        out_specs=pl.BlockSpec((1, tj, c_pad, trw), lambda i, j: (i, j, 0, 0)),
        compiler_params=cparams,
        cost_estimate=cost2,
        input_output_aliases={0: 0},
    )(y, scale, shift)

    # ---- compact the padded row-block layout to NCHW float32.  Single fused XLA copy pass
    #      (transpose + slice + cast); far cheaper than the removed k^2 im2col expansion.
    out = y_bn.reshape(n, t, c_pad, tr, w_pack)
    out = jnp.transpose(out, (0, 2, 1, 3, 4)).reshape(n, c_pad, h_al, w_pack)
    return out[:, :c_out, :h_out, :w_out].astype(jnp.float32)


def _reference(x_nchw, conv_w, conv_b, bn_gamma, bn_beta, k, p):
    y = jax.lax.conv_general_dilated(
        x_nchw.astype(jnp.float32), conv_w.astype(jnp.float32),
        window_strides=(1, 1), padding=[(p, p), (p, p)],
        dimension_numbers=("NCHW", "OIHW", "NCHW"))
    y = y + conv_b.reshape(1, -1, 1, 1)
    mean = jnp.mean(y, axis=(0, 2, 3), keepdims=True)
    var = jnp.mean((y - mean) ** 2, axis=(0, 2, 3), keepdims=True)  # biased, as in BN fwd
    return (y - mean) / jnp.sqrt(var + BN_EPS) * bn_gamma.reshape(1, -1, 1, 1) \
        + bn_beta.reshape(1, -1, 1, 1)


if __name__ == "__main__":
    # ConvBlock(in_c=4, out_c=8, k=3, s=1, p=1)  (module ignores s; stride is 1)
    N, C_IN, H, W = 2, 4, 16, 16
    C_OUT, K, P = 8, 3, 1

    key = jax.random.PRNGKey(0)
    kx, kw, kb = jax.random.split(key, 3)

    x = jax.random.normal(kx, (N, C_IN, H, W), dtype=jnp.float32)

    # Conv2d-style uniform init; BN defaults gamma=1, beta=0.
    fan_in = C_IN * K * K
    bound = 1.0 / (fan_in ** 0.5)
    conv_w = jax.random.uniform(kw, (C_OUT, C_IN, K, K), jnp.float32, -bound, bound)
    conv_b = jax.random.uniform(kb, (C_OUT,), jnp.float32, -bound, bound)
    bn_gamma = jnp.ones((C_OUT,), jnp.float32)
    bn_beta = jnp.zeros((C_OUT,), jnp.float32)

    ref = _reference(x, conv_w, conv_b, bn_gamma, bn_beta, K, P)

    # Strict check: full f32 path (f32 operands, f32 storage of y).
    out_f32 = conv_block_forward(x, conv_w, conv_b, bn_gamma, bn_beta,
                                 k=K, p=P, compute_dtype=jnp.float32)
    out_f32 = jax.block_until_ready(out_f32)
    assert out_f32.shape == (N, C_OUT, H, W), out_f32.shape
    assert jnp.allclose(out_f32, ref, atol=1e-3, rtol=1e-3), \
        float(jnp.max(jnp.abs(out_f32 - ref)))

    # Production path: bf16 MXU operands + bf16 storage of the y intermediate, f32
    # accumulation and BN statistics (looser tolerance reflects bf16 storage rounding).
    out_bf16 = conv_block_forward(x, conv_w, conv_b, bn_gamma, bn_beta, k=K, p=P)
    out_bf16 = jax.block_until_ready(out_bf16)
    assert out_bf16.shape == (N, C_OUT, H, W), out_bf16.shape
    assert jnp.allclose(out_bf16, ref, atol=1e-1, rtol=1e-1), \
        float(jnp.max(jnp.abs(out_bf16 - ref)))

    print("KERNEL_OK")
</pallas_src>

<mosaic_0001>
module attributes {stable_mosaic.version = 11 : i64} {
  func.func @_fused_conv_stats_kernel(%arg0: i32, %arg1: i32, %arg2: memref<1x1x4x608xf32, #tpu.memory_space<vmem>>, %arg3: memref<9x8x4xf32, #tpu.memory_space<vmem>>, %arg4: memref<1x1x512xf32, #tpu.memory_space<vmem>>, %arg5: memref<1x1x8x512xf32, #tpu.memory_space<vmem>>, %arg6: memref<1x1x8x2xf32, #tpu.memory_space<vmem>>) attributes {dimension_semantics = [#tpu.dimension_semantics<parallel>, #tpu.dimension_semantics<parallel>], iteration_bounds = array<i64: 2, 1>, scalar_prefetch = 0 : i64, scratch_operands = 0 : i64, tpu.core_type = #tpu.core_type<tc>, window_params = [{transform_indices = @transform_0, window_bounds = array<i64: 1, 1, 4, 608>}, {pipeline_mode = #tpu.pipeline_mode<synchronous>, transform_indices = @transform_1, window_bounds = array<i64: 9, 8, 4>}, {transform_indices = @transform_2, window_bounds = array<i64: 1, 1, 512>}, {transform_indices = @transform_3, window_bounds = array<i64: 1, 1, 8, 512>}, {transform_indices = @transform_4, window_bounds = array<i64: 1, 1, 8, 2>}]} {
    %c0 = arith.constant 0 : index
    %c0_0 = arith.constant 0 : index
    %c0_1 = arith.constant 0 : index
    %c0_2 = arith.constant 0 : index
    %0 = vector.load %arg2[%c0, %c0_0, %c0_1, %c0_2] : memref<1x1x4x608xf32, #tpu.memory_space<vmem>>, vector<1x1x4x512xf32>
    %1 = vector.shape_cast %0 : vector<1x1x4x512xf32> to vector<4x512xf32>
    %c0_3 = arith.constant 0 : index
    %c0_4 = arith.constant 0 : index
    %c0_5 = arith.constant 0 : index
    %2 = vector.load %arg3[%c0_3, %c0_4, %c0_5] : memref<9x8x4xf32, #tpu.memory_space<vmem>>, vector<1x8x4xf32>
    %3 = vector.shape_cast %2 : vector<1x8x4xf32> to vector<8x4xf32>
    %cst = arith.constant dense<0.000000e+00> : vector<8x512xf32>
    %4 = tpu.matmul %3, %1, %cst {dimension_numbers = #tpu.dot_dimension_numbers<[1], [0], [0], [1], [0, 0, 1, 1], [], []>} : vector<8x4xf32>, vector<4x512xf32>, vector<8x512xf32> -> vector<8x512xf32>
    %c0_6 = arith.constant 0 : index
    %c0_7 = arith.constant 0 : index
    %c0_8 = arith.constant 0 : index
    %c1 = arith.constant 1 : index
    %5 = vector.load %arg2[%c0_6, %c0_7, %c0_8, %c1] : memref<1x1x4x608xf32, #tpu.memory_space<vmem>>, vector<1x1x4x512xf32>
    %6 = vector.shape_cast %5 : vector<1x1x4x512xf32> to vector<4x512xf32>
    %c1_9 = arith.constant 1 : index
    %c0_10 = arith.constant 0 : index
    %c0_11 = arith.constant 0 : index
    %7 = vector.load %arg3[%c1_9, %c0_10, %c0_11] : memref<9x8x4xf32, #tpu.memory_space<vmem>>, vector<1x8x4xf32>
    %8 = vector.shape_cast %7 : vector<1x8x4xf32> to vector<8x4xf32>
    %cst_12 = arith.constant dense<0.000000e+00> : vector<8x512xf32>
    %9 = tpu.matmul %8, %6, %cst_12 {dimension_numbers = #tpu.dot_dimension_numbers<[1], [0], [0], [1], [0, 0, 1, 1], [], []>} : vector<8x4xf32>, vector<4x512xf32>, vector<8x512xf32> -> vector<8x512xf32>
    %10 = arith.addf %4, %9 : vector<8x512xf32>
    %c0_13 = arith.constant 0 : index
    %c0_14 = arith.constant 0 : index
    %c0_15 = arith.constant 0 : index
    %c2 = arith.constant 2 : index
    %11 = vector.load %arg2[%c0_13, %c0_14, %c0_15, %c2] : memref<1x1x4x608xf32, #tpu.memory_space<vmem>>, vector<1x1x4x512xf32>
    %12 = vector.shape_cast %11 : vector<1x1x4x512xf32> to vector<4x512xf32>
    %c2_16 = arith.constant 2 : index
    %c0_17 = arith.constant 0 : index
    %c0_18 = arith.constant 0 : index
    %13 = vector.load %arg3[%c2_16, %c0_17, %c0_18] : memref<9x8x4xf32, #tpu.memory_space<vmem>>, vector<1x8x4xf32>
    %14 = vector.shape_cast %13 : vector<1x8x4xf32> to vector<8x4xf32>
    %cst_19 = arith.constant dense<0.000000e+00> : vector<8x512xf32>
    %15 = tpu.matmul %14, %12, %cst_19 {dimension_numbers = #tpu.dot_dimension_numbers<[1], [0], [0], [1], [0, 0, 1, 1], [], []>} : vector<8x4xf32>, vector<4x512xf32>, vector<8x512xf32> -> vector<8x512xf32>
    %16 = arith.addf %10, %15 : vector<8x512xf32>
    %c0_20 = arith.constant 0 : index
    %c0_21 = arith.constant 0 : index
    %c0_22 = arith.constant 0 : index
    %c32 = arith.constant 32 : index
    %17 = vector.load %arg2[%c0_20, %c0_21, %c0_22, %c32] : memref<1x1x4x608xf32, #tpu.memory_space<vmem>>, vector<1x1x4x512xf32>
    %18 = vector.shape_cast %17 : vector<1x1x4x512xf32> to vector<4x512xf32>
    %c3 = arith.constant 3 : index
    %c0_23 = arith.constant 0 : index
    %c0_24 = arith.constant 0 : index
    %19 = vector.load %arg3[%c3, %c0_23, %c0_24] : memref<9x8x4xf32, #tpu.memory_space<vmem>>, vector<1x8x4xf32>
    %20 = vector.shape_cast %19 : vector<1x8x4xf32> to vector<8x4xf32>
    %cst_25 = arith.constant dense<0.000000e+00> : vector<8x512xf32>
    %21 = tpu.matmul %20, %18, %cst_25 {dimension_numbers = #tpu.dot_dimension_numbers<[1], [0], [0], [1], [0, 0, 1, 1], [], []>} : vector<8x4xf32>, vector<4x512xf32>, vector<8x512xf32> -> vector<8x512xf32>
    %22 = arith.addf %16, %21 : vector<8x512xf32>
    %c0_26 = arith.constant 0 : index
    %c0_27 = arith.constant 0 : index
    %c0_28 = arith.constant 0 : index
    %c33 = arith.constant 33 : index
    %23 = vector.load %arg2[%c0_26, %c0_27, %c0_28, %c33] : memref<1x1x4x608xf32, #tpu.memory_space<vmem>>, vector<1x1x4x512xf32>
    %24 = vector.shape_cast %23 : vector<1x1x4x512xf32> to vector<4x512xf32>
    %c4 = arith.constant 4 : index
    %c0_29 = arith.constant 0 : index
    %c0_30 = arith.constant 0 : index
    %25 = vector.load %arg3[%c4, %c0_29, %c0_30] : memref<9x8x4xf32, #tpu.memory_space<vmem>>, vector<1x8x4xf32>
    %26 = vector.shape_cast %25 : vector<1x8x4xf32> to vector<8x4xf32>
    %cst_31 = arith.constant dense<0.000000e+00> : vector<8x512xf32>
    %27 = tpu.matmul %26, %24, %cst_31 {dimension_numbers = #tpu.dot_dimension_numbers<[1], [0], [0], [1], [0, 0, 1, 1], [], []>} : vector<8x4xf32>, vector<4x512xf32>, vector<8x512xf32> -> vector<8x512xf32>
    %28 = arith.addf %22, %27 : vector<8x512xf32>
    %c0_32 = arith.constant 0 : index
    %c0_33 = arith.constant 0 : index
    %c0_34 = arith.constant 0 : index
    %c34 = arith.constant 34 : index
    %29 = vector.load %arg2[%c0_32, %c0_33, %c0_34, %c34] : memref<1x1x4x608xf32, #tpu.memory_space<vmem>>, vector<1x1x4x512xf32>
    %30 = vector.shape_cast %29 : vector<1x1x4x512xf32> to vector<4x512xf32>
    %c5 = arith.constant 5 : index
    %c0_35 = arith.constant 0 : index
    %c0_36 = arith.constant 0 : index
    %31 = vector.load %arg3[%c5, %c0_35, %c0_36] : memref<9x8x4xf32, #tpu.memory_space<vmem>>, vector<1x8x4xf32>
    %32 = vector.shape_cast %31 : vector<1x8x4xf32> to vector<8x4xf32>
    %cst_37 = arith.constant dense<0.000000e+00> : vector<8x512xf32>
    %33 = tpu.matmul %32, %30, %cst_37 {dimension_numbers = #tpu.dot_dimension_numbers<[1], [0], [0], [1], [0, 0, 1, 1], [], []>} : vector<8x4xf32>, vector<4x512xf32>, vector<8x512xf32> -> vector<8x512xf32>
    %34 = arith.addf %28, %33 : vector<8x512xf32>
    %c0_38 = arith.constant 0 : index
    %c0_39 = arith.constant 0 : index
    %c0_40 = arith.constant 0 : index
    %c64 = arith.constant 64 : index
    %35 = vector.load %arg2[%c0_38, %c0_39, %c0_40, %c64] : memref<1x1x4x608xf32, #tpu.memory_space<vmem>>, vector<1x1x4x512xf32>
    %36 = vector.shape_cast %35 : vector<1x1x4x512xf32> to vector<4x512xf32>
    %c6 = arith.constant 6 : index
    %c0_41 = arith.constant 0 : index
    %c0_42 = arith.constant 0 : index
    %37 = vector.load %arg3[%c6, %c0_41, %c0_42] : memref<9x8x4xf32, #tpu.memory_space<vmem>>, vector<1x8x4xf32>
    %38 = vector.shape_cast %37 : vector<1x8x4xf32> to vector<8x4xf32>
    %cst_43 = arith.constant dense<0.000000e+00> : vector<8x512xf32>
    %39 = tpu.matmul %38, %36, %cst_43 {dimension_numbers = #tpu.dot_dimension_numbers<[1], [0], [0], [1], [0, 0, 1, 1], [], []>} : vector<8x4xf32>, vector<4x512xf32>, vector<8x512xf32> -> vector<8x512xf32>
    %40 = arith.addf %34, %39 : vector<8x512xf32>
    %c0_44 = arith.constant 0 : index
    %c0_45 = arith.constant 0 : index
    %c0_46 = arith.constant 0 : index
    %c65 = arith.constant 65 : index
    %41 = vector.load %arg2[%c0_44, %c0_45, %c0_46, %c65] : memref<1x1x4x608xf32, #tpu.memory_space<vmem>>, vector<1x1x4x512xf32>
    %42 = vector.shape_cast %41 : vector<1x1x4x512xf32> to vector<4x512xf32>
    %c7 = arith.constant 7 : index
    %c0_47 = arith.constant 0 : index
    %c0_48 = arith.constant 0 : index
    %43 = vector.load %arg3[%c7, %c0_47, %c0_48] : memref<9x8x4xf32, #tpu.memory_space<vmem>>, vector<1x8x4xf32>
    %44 = vector.shape_cast %43 : vector<1x8x4xf32> to vector<8x4xf32>
    %cst_49 = arith.constant dense<0.000000e+00> : vector<8x512xf32>
    %45 = tpu.matmul %44, %42, %cst_49 {dimension_numbers = #tpu.dot_dimension_numbers<[1], [0], [0], [1], [0, 0, 1, 1], [], []>} : vector<8x4xf32>, vector<4x512xf32>, vector<8x512xf32> -> vector<8x512xf32>
    %46 = arith.addf %40, %45 : vector<8x512xf32>
    %c0_50 = arith.constant 0 : index
    %c0_51 = arith.constant 0 : index
    %c0_52 = arith.constant 0 : index
    %c66 = arith.constant 66 : index
    %47 = vector.load %arg2[%c0_50, %c0_51, %c0_52, %c66] : memref<1x1x4x608xf32, #tpu.memory_space<vmem>>, vector<1x1x4x512xf32>
    %48 = vector.shape_cast %47 : vector<1x1x4x512xf32> to vector<4x512xf32>
    %c8 = arith.constant 8 : index
    %c0_53 = arith.constant 0 : index
    %c0_54 = arith.constant 0 : index
    %49 = vector.load %arg3[%c8, %c0_53, %c0_54] : memref<9x8x4xf32, #tpu.memory_space<vmem>>, vector<1x8x4xf32>
    %50 = vector.shape_cast %49 : vector<1x8x4xf32> to vector<8x4xf32>
    %cst_55 = arith.constant dense<0.000000e+00> : vector<8x512xf32>
    %51 = tpu.matmul %50, %48, %cst_55 {dimension_numbers = #tpu.dot_dimension_numbers<[1], [0], [0], [1], [0, 0, 1, 1], [], []>} : vector<8x4xf32>, vector<4x512xf32>, vector<8x512xf32> -> vector<8x512xf32>
    %52 = arith.addf %46, %51 : vector<8x512xf32>
    %c0_56 = arith.constant 0 : index
    %c0_57 = arith.constant 0 : index
    %c0_58 = arith.constant 0 : index
    %c0_59 = arith.constant 0 : index
    %53 = vector.load %arg5[%c0_56, %c0_57, %c0_58, %c0_59] : memref<1x1x8x512xf32, #tpu.memory_space<vmem>>, vector<1x1x8x512xf32>
    %54 = vector.shape_cast %53 : vector<1x1x8x512xf32> to vector<8x512xf32>
    %55 = vector.shape_cast %52 : vector<8x512xf32> to vector<1x1x8x512xf32>
    tpu.vector_store %arg5[%c0_56, %c0_57, %c0_58, %c0_59], %55 {strides = array<i32>} : memref<1x1x8x512xf32, #tpu.memory_space<vmem>>, vector<1x1x8x512xf32>,
    %c0_60 = arith.constant 0 : index
    %c0_61 = arith.constant 0 : index
    %c0_62 = arith.constant 0 : index
    %56 = vector.load %arg4[%c0_60, %c0_61, %c0_62] : memref<1x1x512xf32, #tpu.memory_space<vmem>>, vector<1x1x512xf32>
    %57 = vector.shape_cast %56 : vector<1x1x512xf32> to vector<1x512xf32>
    %cst_63 = arith.constant dense<0.000000e+00> : vector<1xf32>
    %58 = vector.multi_reduction <add>, %57, %cst_63 [1] : vector<1x512xf32> to vector<1xf32>
    %59 = vector.shape_cast %58 : vector<1xf32> to vector<1x1xf32>
    %60 = vector.broadcast %57 : vector<1x512xf32> to vector<8x512xf32>
    %61 = arith.mulf %52, %60 : vector<8x512xf32>
    %cst_64 = arith.constant dense<0.000000e+00> : vector<8xf32>
    %62 = vector.multi_reduction <add>, %61, %cst_64 [1] : vector<8x512xf32> to vector<8xf32>
    %63 = vector.shape_cast %62 : vector<8xf32> to vector<8x1xf32>
    %64 = vector.broadcast %59 : vector<1x1xf32> to vector<8x1xf32>
    %65 = arith.divf %63, %64 : vector<8x1xf32>
    %66 = vector.broadcast %65 : vector<8x1xf32> to vector<8x512xf32>
    %67 = arith.subf %52, %66 : vector<8x512xf32>
    %68 = vector.broadcast %57 : vector<1x512xf32> to vector<8x512xf32>
    %69 = arith.mulf %67, %68 : vector<8x512xf32>
    %70 = arith.mulf %69, %69 : vector<8x512xf32>
    %cst_65 = arith.constant dense<0.000000e+00> : vector<8xf32>
    %71 = vector.multi_reduction <add>, %70, %cst_65 [1] : vector<8x512xf32> to vector<8xf32>
    %72 = vector.shape_cast %71 : vector<8xf32> to vector<8x1xf32>
    %73 = tpu.concatenate %63, %72 in 1 : vector<8x1xf32>, vector<8x1xf32> -> vector<8x2xf32>
    %c0_66 = arith.constant 0 : index
    %c0_67 = arith.constant 0 : index
    %c0_68 = arith.constant 0 : index
    %c0_69 = arith.constant 0 : index
    %74 = vector.load %arg6[%c0_66, %c0_67, %c0_68, %c0_69] : memref<1x1x8x2xf32, #tpu.memory_space<vmem>>, vector<1x1x8x2xf32>
    %75 = vector.shape_cast %74 : vector<1x1x8x2xf32> to vector<8x2xf32>
    %76 = vector.shape_cast %73 : vector<8x2xf32> to vector<1x1x8x2xf32>
    tpu.vector_store %arg6[%c0_66, %c0_67, %c0_68, %c0_69], %76 {strides = array<i32>} : memref<1x1x8x2xf32, #tpu.memory_space<vmem>>, vector<1x1x8x2xf32>,
    return
  }
  func.func @transform_0(%arg0: i32, %arg1: i32) -> (i32, i32, i32, i32) {
    %c0_i32 = arith.constant 0 : i32
    %c0_i32_0 = arith.constant 0 : i32
    %c0_i32_1 = arith.constant 0 : i32
    return %arg0, %arg1, %c0_i32, %c0_i32_0 : i32, i32, i32, i32
  }
  func.func @transform_1(%arg0: i32, %arg1: i32) -> (i32, i32, i32) {
    %c0_i32 = arith.constant 0 : i32
    %c0_i32_0 = arith.constant 0 : i32
    %c0_i32_1 = arith.constant 0 : i32
    %c0_i32_2 = arith.constant 0 : i32
    return %c0_i32, %c0_i32_0, %c0_i32_1 : i32, i32, i32
  }
  func.func @transform_2(%arg0: i32, %arg1: i32) -> (i32, i32, i32) {
    %c0_i32 = arith.constant 0 : i32
    %c0_i32_0 = arith.constant 0 : i32
    %c0_i32_1 = arith.constant 0 : i32
    return %arg1, %c0_i32, %c0_i32_0 : i32, i32, i32
  }
  func.func @transform_3(%arg0: i32, %arg1: i32) -> (i32, i32, i32, i32) {
    %c0_i32 = arith.constant 0 : i32
    %c0_i32_0 = arith.constant 0 : i32
    %c0_i32_1 = arith.constant 0 : i32
    return %arg0, %arg1, %c0_i32, %c0_i32_0 : i32, i32, i32, i32
  }
  func.func @transform_4(%arg0: i32, %arg1: i32) -> (i32, i32, i32, i32) {
    %c0_i32 = arith.constant 0 : i32
    %c0_i32_0 = arith.constant 0 : i32
    %c0_i32_1 = arith.constant 0 : i32
    return %arg0, %arg1, %c0_i32, %c0_i32_0 : i32, i32, i32, i32
  }
}

module attributes {stable_mosaic.version = 11 : i64} {
  func.func @_bn_apply_kernel(%arg0: i32, %arg1: i32, %arg2: memref<1x1x8x512xf32, #tpu.memory_space<vmem>>, %arg3: memref<8x1xf32, #tpu.memory_space<vmem>>, %arg4: memref<8x1xf32, #tpu.memory_space<vmem>>, %arg5: memref<1x1x8x512xf32, #tpu.memory_space<vmem>>) attributes {dimension_semantics = [#tpu.dimension_semantics<parallel>, #tpu.dimension_semantics<parallel>], iteration_bounds = array<i64: 2, 1>, scalar_prefetch = 0 : i64, scratch_operands = 0 : i64, tpu.core_type = #tpu.core_type<tc>, window_params = [{transform_indices = @transform_0, window_bounds = array<i64: 1, 1, 8, 512>}, {pipeline_mode = #tpu.pipeline_mode<synchronous>, transform_indices = @transform_1, window_bounds = array<i64: 8, 1>}, {pipeline_mode = #tpu.pipeline_mode<synchronous>, transform_indices = @transform_2, window_bounds = array<i64: 8, 1>}, {transform_indices = @transform_3, window_bounds = array<i64: 1, 1, 8, 512>}]} {
    %c0 = arith.constant 0 : index
    %c0_0 = arith.constant 0 : index
    %c0_1 = arith.constant 0 : index
    %c0_2 = arith.constant 0 : index
    %0 = vector.load %arg2[%c0, %c0_0, %c0_1, %c0_2] : memref<1x1x8x512xf32, #tpu.memory_space<vmem>>, vector<1x1x8x512xf32>
    %1 = vector.shape_cast %0 : vector<1x1x8x512xf32> to vector<1x8x512xf32>
    %c0_3 = arith.constant 0 : index
    %c0_4 = arith.constant 0 : index
    %2 = vector.load %arg3[%c0_3, %c0_4] : memref<8x1xf32, #tpu.memory_space<vmem>>, vector<8x1xf32>
    %3 = vector.shape_cast %2 : vector<8x1xf32> to vector<1x8x1xf32>
    %4 = vector.broadcast %3 : vector<1x8x1xf32> to vector<1x8x512xf32>
    %5 = arith.mulf %1, %4 : vector<1x8x512xf32>
    %c0_5 = arith.constant 0 : index
    %c0_6 = arith.constant 0 : index
    %6 = vector.load %arg4[%c0_5, %c0_6] : memref<8x1xf32, #tpu.memory_space<vmem>>, vector<8x1xf32>
    %7 = vector.shape_cast %6 : vector<8x1xf32> to vector<1x8x1xf32>
    %8 = vector.broadcast %7 : vector<1x8x1xf32> to vector<1x8x512xf32>
    %9 = arith.addf %5, %8 : vector<1x8x512xf32>
    %c0_7 = arith.constant 0 : index
    %c0_8 = arith.constant 0 : index
    %c0_9 = arith.constant 0 : index
    %c0_10 = arith.constant 0 : index
    %10 = vector.load %arg5[%c0_7, %c0_8, %c0_9, %c0_10] : memref<1x1x8x512xf32, #tpu.memory_space<vmem>>, vector<1x1x8x512xf32>
    %11 = vector.shape_cast %10 : vector<1x1x8x512xf32> to vector<1x8x512xf32>
    %12 = vector.shape_cast %9 : vector<1x8x512xf32> to vector<1x1x8x512xf32>
    tpu.vector_store %arg5[%c0_7, %c0_8, %c0_9, %c0_10], %12 {strides = array<i32>} : memref<1x1x8x512xf32, #tpu.memory_space<vmem>>, vector<1x1x8x512xf32>,
    return
  }
  func.func @transform_0(%arg0: i32, %arg1: i32) -> (i32, i32, i32, i32) {
    %c0_i32 = arith.constant 0 : i32
    %c0_i32_0 = arith.constant 0 : i32
    %c0_i32_1 = arith.constant 0 : i32
    return %arg0, %arg1, %c0_i32, %c0_i32_0 : i32, i32, i32, i32
  }
  func.func @transform_1(%arg0: i32, %arg1: i32) -> (i32, i32) {
    %c0_i32 = arith.constant 0 : i32
    %c0_i32_0 = arith.constant 0 : i32
    %c0_i32_1 = arith.constant 0 : i32
    return %c0_i32, %c0_i32_0 : i32, i32
  }
  func.func @transform_2(%arg0: i32, %arg1: i32) -> (i32, i32) {
    %c0_i32 = arith.constant 0 : i32
    %c0_i32_0 = arith.constant 0 : i32
    %c0_i32_1 = arith.constant 0 : i32
    return %c0_i32, %c0_i32_0 : i32, i32
  }
  func.func @transform_3(%arg0: i32, %arg1: i32) -> (i32, i32, i32, i32) {
    %c0_i32 = arith.constant 0 : i32
    %c0_i32_0 = arith.constant 0 : i32
    %c0_i32_1 = arith.constant 0 : i32
    return %arg0, %arg1, %c0_i32, %c0_i32_0 : i32, i32, i32, i32
  }
}

</mosaic_0001>

<bundles_post_ra>
// kernel: conv_block_forward.3
= control target key start
LH: loop header
LB: loop body
LE: loop exit
PB: predicated region body
PF: predicated region fallthrough
CT: control target
= control target key end

     0   :  { %s411_s12 = smov 0   ;;  %s413_s13 = smov 0   ;;  %s450_s0 = inlined_call_operand.vmem [shape: f32[2,1,8,512], index: 0, kind: input, shape index: {}, may-alias: {0,3}]   ;;  %s451_s1 = inlined_call_operand.vmem [shape: f32[8,1], index: 1, kind: input, shape index: {}]   ;;  %s452_s2 = inlined_call_operand.vmem [shape: f32[8,1], index: 2, kind: input, shape index: {}]   ;;  %s453_s3 = inlined_call_operand.vmem [shape: f32[2,1,8,512], index: 3, kind: output, shape index: {}, may-alias: {0,3}]  }
   0x1   :  { %s415_s14 = smov 0  }
   0x2 LB: > { %s25_s15 = sadd.s32 1, %s384_s13  ;;  %p331_p0 = scmp.ge.s32.totalorder %s388_s14, 1  ;;  %s388_s14 = sphi %s415_s14, %s13_s14   ;;  %s384_s13 = sphi %s413_s13, %s455_s13   ;;  %s380_s12 = sphi %s411_s12, %s454_s12  }
   0x3   : > { %p27_p1 = scmp.ge.s32.totalorder %s25_s15, 2  ;;  %p157_p2 = scmp.lt.s32.totalorder %s388_s14, 3 }
   0x5   : > { %s457_s15 = smov (%p27_p1, %s25_s15), 0  ;;  %p158_p3 = pnand %p331_p0, %p157_p2 }
   0x6   : > { %v211_v0 = vld [vmem:[%s451_s1] sm:$0xff] (!%p158_p3)  ;;  %v390_v1 = vmov (!%p158_p3), 0   ;;  %p189_p4 = scmp.lt.s32.totalorder (!%p158_p3), %s380_s12, 1 }
   0x7   : > { %161 = sbr.rel (%p158_p3) target bundleno = 144 (0x90), region = 32  ;;  %365 = vset.pattern.permute.xlu0 (!%p158_p3), %v390_v1  ;;  %v221_v2 = vld [vmem:[%s452_s2] sm:$0xff] (!%p158_p3) }
   0x8   : > { %214 = vperm.xlu0 (!%p158_p3), %365, %v211_v0  }
   0xc   : > { %224 = vperm.xlu0 (!%p158_p3), %365, %v221_v2  }
   0xe   : > { %s459_s12 = smov (!%p189_p4, %s380_s12), 1 }
   0xf   : > { %s338_s20 = sshll.u32 %s459_s12, 5 }
  0x10   : > { %s197_s23 = scalar_lea.vmem %s450_s0, %s338_s20  ;;  %s206_s26 = scalar_lea.vmem %s453_s3, %s338_s20 }
  0x11   : > { %v207_v3 = vld [vmem:[%s197_s23] sm:$0xff]  ;;  %v208_v5 = vld [vmem:[%s197_s23 + $0x8] sm:$0xff]  ;;  %v209_v6 = vld [vmem:[%s197_s23 + $0x10] sm:$0xff] }
  0x12   : > { %v210_v7 = vld [vmem:[%s197_s23 + $0x18] sm:$0xff] }
  0x87   : > { %v215_v4 = vpop.permute.xlu0 %214 }
  0x88   : > { %v217_v8 = vmul.f32 %v215_v4, %v207_v3  ;;  %v218_v9 = vmul.f32 %v215_v4, %v208_v5  ;;  %v219_v10 = vmul.f32 %v215_v4, %v209_v6  ;;  %v220_v11 = vmul.f32 %v215_v4, %v210_v7 }
  0x8b   : > { %v225_v12 = vpop.permute.xlu0 %224 }
  0x8c   : > { %v227_v13 = vadd.f32 %v225_v12, %v217_v8  ;;  %v228_v14 = vadd.f32 %v225_v12, %v218_v9  ;;  %v229_v15 = vadd.f32 %v225_v12, %v219_v10  ;;  %v230_v16 = vadd.f32 %v225_v12, %v220_v11 }
  0x8e   : > { %231 = vst [vmem:[%s206_s26] sm:$0xff] %v227_v13  ;;  %232 = vst [vmem:[%s206_s26 + $0x8] sm:$0xff] %v228_v14 }
  0x8f   : > { %233 = vst [vmem:[%s206_s26 + $0x10] sm:$0xff] %v229_v15  ;;  %234 = vst [vmem:[%s206_s26 + $0x18] sm:$0xff] %v230_v16 }
  0x90 PF: > { %s13_s14 = sadd.s32 1, %s388_s14   ;;  %s454_s12 = smov %s384_s13 }
  0x91   : > { %p10_p5 = scmp.ge.s32.totalorder %s13_s14, 4   ;;  %s455_s13 = smov %s457_s15 }
  0x93   :  { %12 = sbr.rel (!%p10_p5) target bundleno = 2 (0x2), region = 62 }

// kernel: conv_block_forward.2
= control target key start
LH: loop header
LB: loop body
LE: loop exit
PB: predicated region body
PF: predicated region fallthrough
CT: control target
= control target key end

     0   :  { %s2302_s15 = smov 0   ;;  %s2304_s16 = smov 0   ;;  %s2551_s0 = inlined_call_operand.vmem [shape: f32[2,1,4,608], index: 0, kind: input, shape index: {}]   ;;  %s2552_s1 = inlined_call_operand.vmem [shape: f32[9,8,4], index: 1, kind: input, shape index: {}]   ;;  %s2553_s2 = inlined_call_operand.vmem [shape: f32[1,1,512], index: 2, kind: input, shape index: {}]   ;;  %s2554_s3 = inlined_call_operand.vmem [shape: f32[2,1,8,512], index: 3, kind: output, shape index: {0}]   ;;  %s2555_s4 = inlined_call_operand.vmem [shape: f32[2,1,8,2], index: 4, kind: output, shape index: {1}]  }
   0x1   :  { %s2306_s17 = smov 0  }
   0x2 LB: > { %s27_s18 = sadd.s32 1, %s2262_s16  ;;  %p2104_p0 = scmp.ge.s32.totalorder %s2266_s17, 1  ;;  %s2266_s17 = sphi %s2306_s17, %s15_s17   ;;  %s2262_s16 = sphi %s2304_s16, %s2557_s16   ;;  %s2258_s15 = sphi %s2302_s15, %s2556_s15  }
   0x3   : > { %p29_p1 = scmp.ge.s32.totalorder %s27_s18, 2  ;;  %p196_p2 = scmp.lt.s32.totalorder %s2266_s17, 3 }
   0x5   : > { %s2559_s18 = smov (%p29_p1, %s27_s18), 0  ;;  %p197_p3 = pnand %p2104_p0, %p196_p2 }
   0x6   : > { %p241_p4 = scmp.lt.s32.totalorder (!%p197_p3), %s2258_s15, 1  ;;  %v2268_v0 = vmov (!%p197_p3), 0.0   ;;  %s2269_s23 = smov (!%p197_p3), 127   ;;  %v1884_v13 = vlaneseq (!%p197_p3)  ;;  %v1882_v17 = vld [vmem:[%s2553_s2] sm:$0xf] (!%p197_p3)  ;;  %vm1904_vm0 = vcmask (!%p197_p3), 1040384  }
   0x7   : > { %200 = sbr.rel (%p197_p3) target bundleno = 731 (0x2db), region = 32  ;;  %444 = vmatprep.mubr.f32.mxu1 (!%p197_p3), %v2268_v0  ;;  %373 = vmatprep.mubr.f32.mxu0 (!%p197_p3), %v2268_v0  ;;  %s2270_s24 = smov (!%p197_p3), 126   ;;  %vm291_vm1 = vcmask (!%p197_p3), 1039360   ;;  %vm300_vm2 = vcmask (!%p197_p3), 1043456   ;;  %v2109_v37 = vld [vmem:[%s2552_s1 + $0x8] sm:$0xff] (!%p197_p3)  ;;  %vm296_vm3 = vcmask (!%p197_p3), 31744  }
   0x8   : > { %s2271_s25 = smov (!%p197_p3), 96   ;;  %s2272_s26 = smov (!%p197_p3), 95   ;;  %v2384_v14 = vshrl.u32 (!%p197_p3), %v1884_v13, 7  ;;  %vm624_vm4 = vcmask (!%p197_p3), 1031168   ;;  %v272_v45 = vld [vmem:[%s2552_s1] sm:$0xff] (!%p197_p3)  ;;  %vm806_vm5 = vcmask (!%p197_p3), 785408  }
   0x9   : > { %s2273_s27 = smov (!%p197_p3), 94   ;;  %s2274_s28 = smov (!%p197_p3), 64   ;;  %v2122_v54 = vld [vmem:[%s2552_s1 + $0x10] sm:$0xff] (!%p197_p3)  ;;  %vm988_vm6 = vcmask (!%p197_p3), 777216   ;;  %v2129_v62 = vld [vmem:[%s2552_s1 + $0x18] sm:$0xff] (!%p197_p3)  ;;  %vm1170_vm7 = vcmask (!%p197_p3), 769024  }
   0xa   : > { %s2275_s29 = smov (!%p197_p3), 63   ;;  %s2276_s30 = smov (!%p197_p3), 62   ;;  %v1886_v15 = vsub.s32 (!%p197_p3), 0, %v2384_v14  ;;  %v1890_v16 = vsub.s32 (!%p197_p3), 1, %v2384_v14  ;;  %v1894_v20 = vsub.s32 (!%p197_p3), 2, %v2384_v14  ;;  %v1898_v22 = vsub.s32 (!%p197_p3), 3, %v2384_v14 }
   0xb   : > { %vm1352_vm8 = vcmask (!%p197_p3), 523264   ;;  %vm1534_vm9 = vcmask (!%p197_p3), 515072   ;;  %vm1716_vm10 = vcmask (!%p197_p3), 506880   ;;  %vm1946_vm11 = vcmask (!%p197_p3), 7168  }
   0xc   : > { %v2393_v18 = vrot.slane (!%p197_p3), %v1882_v17, %v1886_v15  ;;  %v2395_v19 = vrot.slane (!%p197_p3), %v1882_v17, %v1890_v16  ;;  %v2398_v21 = vrot.slane (!%p197_p3), %v1882_v17, %v1894_v20  ;;  %v2403_v26 = vrot.slane (!%p197_p3), %v1882_v17, %v1898_v22 }
   0xd   : > { %vm1948_vm12 = vcmask (!%p197_p3), 15360  }
   0xe   : > { %s2561_s15 = smov (!%p241_p4, %s2258_s15), 1  ;;  %v1905_v23 = vsel %vm1904_vm0, %v2393_v18, 0.0  ;;  %v1906_v24 = vsel %vm1904_vm0, %v2395_v19, 0.0  ;;  %v1908_v27 = vsel %vm1904_vm0, %v2398_v21, 0.0  ;;  %v1910_v29 = vsel %vm1904_vm0, %v2403_v26, 0.0 }
   0xf   : > { %s2206_s19 = smul.u32 20, %s2561_s15  ;;  %v1907_v25 = vadd.f32 %v1906_v24, %v1905_v23  ;;  %v2143_v23 = vld [vmem:[%s2552_s1 + $0x28] sm:$0xff]  ;;  %s2108_s7 = sshll.u32 %s2561_s15, 3 }
  0x10   : > { %s269_s10 = scalar_lea.vmem %s2555_s4, %s2108_s7 }
  0x11   : > { %s2328_s22 = scalar_lea.vmem %s2551_s0, %s2206_s19  ;;  %v1909_v28 = vadd.f32 %v1908_v27, %v1907_v25 }
  0x12   : > { %v2331_v1 = vld [vmem:[%s2328_s22 + $0x8] sm:$0xff]  ;;  %v2334_v2 = vld [vmem:[%s2328_s22] sm:$0xff]  ;;  %v273_v4 = vld [vmem:[%s2328_s22 + $0x10] sm:$0xf] }
  0x13   : > { %285 = vrot.lane.b32.xlu0 %v2331_v1, %s2269_s23  ;;  %281 = vrot.lane.b32.xlu1 %v2334_v2, %s2269_s23  ;;  %v2340_v3 = vcombine.high %v2331_v1, %v2331_v1  ;;  %v2346_v5 = vcombine.high %v2334_v2, %v2334_v2  ;;  %v606_v6 = vld [vmem:[%s2328_s22 + $0x10] sm:$0xf]  ;;  %v1911_v30 = vadd.f32 %v1910_v29, %v1909_v28 }
  0x14   : > { %v788_v7 = vld [vmem:[%s2328_s22 + $0x10] sm:$0xf] }
  0x15   : > { %v970_v8 = vld [vmem:[%s2328_s22 + $0x10] sm:$0xf] }
  0x16   : > { %v1152_v9 = vld [vmem:[%s2328_s22 + $0x10] sm:$0xf] }
  0x17   : > { %289 = vrot.lane.b32.xlu0 %v273_v4, %s2269_s23  ;;  %287 = vrot.lane.b32.xlu1 %v2340_v3, %s2269_s23  ;;  %v1334_v10 = vld [vmem:[%s2328_s22 + $0x10] sm:$0xf] }
  0x18   : > { %v1516_v11 = vld [vmem:[%s2328_s22 + $0x10] sm:$0xf] }
  0x19   : > { %v1698_v12 = vld [vmem:[%s2328_s22 + $0x10] sm:$0xf] }
  0x1b   : > { %616 = vrot.lane.b32.xlu1 %v2346_v5, %s2270_s24  ;;  %283 = vrot.lane.b32.xlu0 %v2346_v5, %s2269_s23 }
  0x1f   : > { %614 = vrot.lane.b32.xlu1 %v2334_v2, %s2270_s24  ;;  %618 = vrot.lane.b32.xlu0 %v2331_v1, %s2270_s24 }
  0x23   : > { %622 = vrot.lane.b32.xlu1 %v606_v6, %s2270_s24  ;;  %620 = vrot.lane.b32.xlu0 %v2340_v3, %s2270_s24 }
  0x27   : > { %800 = vrot.lane.b32.xlu1 %v2331_v1, %s2271_s25  ;;  %798 = vrot.lane.b32.xlu0 %v2346_v5, %s2271_s25 }
  0x2b   : > { %802 = vrot.lane.b32.xlu1 %v2340_v3, %s2271_s25  ;;  %796 = vrot.lane.b32.xlu0 %v2334_v2, %s2271_s25 }
  0x2f   : > { %980 = vrot.lane.b32.xlu1 %v2346_v5, %s2272_s26  ;;  %804 = vrot.lane.b32.xlu0 %v788_v7, %s2271_s25 }
  0x33   : > { %978 = vrot.lane.b32.xlu1 %v2334_v2, %s2272_s26  ;;  %982 = vrot.lane.b32.xlu0 %v2331_v1, %s2272_s26 }
  0x37   : > { %986 = vrot.lane.b32.xlu1 %v970_v8, %s2272_s26  ;;  %984 = vrot.lane.b32.xlu0 %v2340_v3, %s2272_s26  ;;  %v2136_v8 = vld [vmem:[%s2552_s1 + $0x20] sm:$0xff] }
  0x3b   : > { %1164 = vrot.lane.b32.xlu1 %v2331_v1, %s2273_s27  ;;  %1162 = vrot.lane.b32.xlu0 %v2346_v5, %s2273_s27 }
  0x3f   : > { %1166 = vrot.lane.b32.xlu1 %v2340_v3, %s2273_s27  ;;  %1160 = vrot.lane.b32.xlu0 %v2334_v2, %s2273_s27 }
  0x43   : > { %1344 = vrot.lane.b32.xlu1 %v2346_v5, %s2274_s28  ;;  %1168 = vrot.lane.b32.xlu0 %v1152_v9, %s2273_s27 }
  0x47   : > { %1342 = vrot.lane.b32.xlu1 %v2334_v2, %s2274_s28  ;;  %1346 = vrot.lane.b32.xlu0 %v2331_v1, %s2274_s28 }
  0x4b   : > { %1350 = vrot.lane.b32.xlu1 %v1334_v10, %s2274_s28  ;;  %1348 = vrot.lane.b32.xlu0 %v2340_v3, %s2274_s28 }
  0x4f   : > { %1528 = vrot.lane.b32.xlu1 %v2331_v1, %s2275_s29  ;;  %1526 = vrot.lane.b32.xlu0 %v2346_v5, %s2275_s29 }
  0x53   : > { %1530 = vrot.lane.b32.xlu1 %v2340_v3, %s2275_s29  ;;  %1524 = vrot.lane.b32.xlu0 %v2334_v2, %s2275_s29 }
  0x57   : > { %1708 = vrot.lane.b32.xlu1 %v2346_v5, %s2276_s30  ;;  %1532 = vrot.lane.b32.xlu0 %v1516_v11, %s2275_s29  ;;  %s2173_s29 = sshll.u32 %s2561_s15, 5 }
  0x58   : > { %s262_s6 = scalar_lea.vmem %s2554_s3, %s2173_s29 }
  0x5b   : > { %1706 = vrot.lane.b32.xlu1 %v2334_v2, %s2276_s30  ;;  %1710 = vrot.lane.b32.xlu0 %v2331_v1, %s2276_s30 }
  0x5f   : > { %1714 = vrot.lane.b32.xlu1 %v1698_v12, %s2276_s30  ;;  %1712 = vrot.lane.b32.xlu0 %v2340_v3, %s2276_s30 }
  0x7e   : > { %1912 = vadd.xlane.f32.xlu0 %v1911_v30 }
  0x85   : > { %v286_v31 = vpop.permute.xlu0 %285  ;;  %v282_v32 = vpop.permute.xlu1 %281 }
  0x89   : > { %v290_v33 = vpop.permute.xlu0 %289  ;;  %v288_v34 = vpop.permute.xlu1 %287 }
  0x8a   : > { %v295_v35 = vsel %vm291_vm1, %v288_v34, %v290_v33  ;;  %v294_v36 = vsel %vm291_vm1, %v286_v31, %v288_v34  ;;  %v2150_v34 = vld [vmem:[%s2552_s1 + $0x30] sm:$0xff] }
  0x8b   : > { %2113 = vmatprep.subr.msk.mxu1 %vm300_vm2, %v295_v35 }
  0x8c   : > { %2114 = vmatpush1.msk.msra.mxu1 %vm300_vm2, %v294_v36 }
  0x8d   : > { %v617_v38 = vpop.permute.xlu1 %616  ;;  %v284_v39 = vpop.permute.xlu0 %283  ;;  %2115 = vmatmul.mubr.msk.f32.vlgmr.msra.gmra.mrb[0].mxu1 %vm296_vm3, %v2109_v37  ;;  %2119 = vmatprep.subr.msk.mxu1 %vm300_vm2, %v2340_v3 }
  0x8e   : > { %v293_v40 = vsel %vm291_vm1, %v284_v39, %v286_v31  ;;  %v292_v41 = vsel %vm291_vm1, %v282_v32, %v284_v39  ;;  %2120 = vmatpush1.msk.msra.mxu1 %vm300_vm2, %v2331_v1  ;;  %597 = vmatprep.mubr.f32.mxu1 %v2268_v0 }
  0x8f   : > { %2110 = vmatprep.subr.msk.mxu0 %vm300_vm2, %v293_v40 }
  0x90   : > { %2111 = vmatpush1.msk.msra.mxu0 %vm300_vm2, %v292_v41  ;;  %v2157_v41 = vld [vmem:[%s2552_s1 + $0x38] sm:$0xff] }
  0x91   : > { %v615_v42 = vpop.permute.xlu1 %614  ;;  %2112 = vmatmul.mubr.msk.f32.vlgmr.msra.gmra.mrb[0].mxu0 %vm296_vm3, %v2109_v37  ;;  %2116 = vmatprep.subr.msk.mxu0 %vm300_vm2, %v2346_v5  ;;  %v619_v43 = vpop.permute.xlu0 %618 }
  0x92   : > { %v626_v44 = vsel %vm624_vm4, %v617_v38, %v619_v43  ;;  %2117 = vmatpush1.msk.msra.mxu0 %vm300_vm2, %v2334_v2  ;;  %526 = vmatprep.mubr.f32.mxu0 %v2268_v0  ;;  %v625_v50 = vsel %vm624_vm4, %v615_v42, %v617_v38 }
  0x93   : > { %2123 = vmatprep.subr.msk.mxu0 %vm300_vm2, %v626_v44 }
  0x95   : > { %v623_v46 = vpop.permute.xlu1 %622  ;;  %v621_v47 = vpop.permute.xlu0 %620  ;;  %2121 = vmatmul.mubr.msk.f32.vlgmr.msra.gmra.mrb[0].mxu1 %vm296_vm3, %v272_v45 }
  0x96   : > { %v627_v48 = vsel %vm624_vm4, %v619_v43, %v621_v47  ;;  %v628_v49 = vsel %vm624_vm4, %v621_v47, %v623_v46  ;;  %775 = vmatprep.mubr.f32.mxu1 %v2268_v0 }
  0x97   : > { %2126 = vmatprep.subr.msk.mxu1 %vm300_vm2, %v628_v49 }
  0x98   : > { %2127 = vmatpush1.msk.msra.mxu1 %vm300_vm2, %v627_v48 }
  0x99   : > { %v801_v51 = vpop.permute.xlu1 %800  ;;  %2118 = vmatmul.mubr.msk.f32.vlgmr.msra.gmra.mrb[0].mxu0 %vm296_vm3, %v272_v45  ;;  %v799_v52 = vpop.permute.xlu0 %798 }
  0x9a   : > { %2124 = vmatpush1.msk.msra.mxu0 %vm300_vm2, %v625_v50  ;;  %v808_v53 = vsel %vm806_vm5, %v799_v52, %v801_v51  ;;  %704 = vmatprep.mubr.f32.mxu0 %v2268_v0  ;;  %v2164_v50 = vld [vmem:[%s2552_s1 + $0x40] sm:$0xff] }
  0x9b   : > { %2130 = vmatprep.subr.msk.mxu0 %vm300_vm2, %v808_v53 }
  0x9d   : > { %v803_v55 = vpop.permute.xlu1 %802  ;;  %v797_v56 = vpop.permute.xlu0 %796  ;;  %2128 = vmatmul.mubr.msk.f32.vlgmr.msra.gmra.mrb[0].mxu1 %vm296_vm3, %v2122_v54 }
  0x9e   : > { %957 = vmatprep.mubr.f32.mxu1 %v2268_v0  ;;  %v807_v57 = vsel %vm806_vm5, %v797_v56, %v799_v52  ;;  %v809_v61 = vsel %vm806_vm5, %v801_v51, %v803_v55 }
  0xa1   : > { %v981_v58 = vpop.permute.xlu1 %980  ;;  %2125 = vmatmul.mubr.msk.f32.vlgmr.msra.gmra.mrb[0].mxu0 %vm296_vm3, %v2122_v54  ;;  %v805_v59 = vpop.permute.xlu0 %804 }
  0xa2   : > { %2131 = vmatpush1.msk.msra.mxu0 %vm300_vm2, %v807_v57  ;;  %v810_v60 = vsel %vm806_vm5, %v803_v55, %v805_v59  ;;  %886 = vmatprep.mubr.f32.mxu0 %v2268_v0 }
  0xa3   : > { %2133 = vmatprep.subr.msk.mxu1 %vm300_vm2, %v810_v60 }
  0xa4   : > { %2134 = vmatpush1.msk.msra.mxu1 %vm300_vm2, %v809_v61 }
  0xa5   : > { %v979_v63 = vpop.permute.xlu1 %978  ;;  %v983_v1 = vpop.permute.xlu0 %982  ;;  %2135 = vmatmul.mubr.msk.f32.vlgmr.msra.gmra.mrb[0].mxu1 %vm296_vm3, %v2129_v62 }
  0xa6   : > { %v990_v2 = vsel %vm988_vm6, %v981_v58, %v983_v1  ;;  %1139 = vmatprep.mubr.f32.mxu1 %v2268_v0  ;;  %v989_v3 = vsel %vm988_vm6, %v979_v63, %v981_v58 }
  0xa7   : > { %2137 = vmatprep.subr.msk.mxu0 %vm300_vm2, %v990_v2 }
  0xa9   : > { %v987_v4 = vpop.permute.xlu1 %986  ;;  %2132 = vmatmul.mubr.msk.f32.vlgmr.msra.gmra.mrb[0].mxu0 %vm296_vm3, %v2129_v62  ;;  %v985_v5 = vpop.permute.xlu0 %984 }
  0xaa   : > { %2138 = vmatpush1.msk.msra.mxu0 %vm300_vm2, %v989_v3  ;;  %v991_v6 = vsel %vm988_vm6, %v983_v1, %v985_v5  ;;  %v992_v7 = vsel %vm988_vm6, %v985_v5, %v987_v4  ;;  %1068 = vmatprep.mubr.f32.mxu0 %v2268_v0 }
  0xab   : > { %2140 = vmatprep.subr.msk.mxu1 %vm300_vm2, %v992_v7 }
  0xac   : > { %2141 = vmatpush1.msk.msra.mxu1 %vm300_vm2, %v991_v6 }
  0xad   : > { %v1165_v9 = vpop.permute.xlu1 %1164  ;;  %v1163_v10 = vpop.permute.xlu0 %1162  ;;  %2142 = vmatmul.mubr.msk.f32.vlgmr.msra.gmra.mrb[0].mxu1 %vm296_vm3, %v2136_v8 }
  0xae   : > { %v1172_v11 = vsel %vm1170_vm7, %v1163_v10, %v1165_v9  ;;  %1321 = vmatprep.mubr.f32.mxu1 %v2268_v0 }
  0xaf   : > { %2144 = vmatprep.subr.msk.mxu0 %vm300_vm2, %v1172_v11 }
  0xb1   : > { %v1167_v12 = vpop.permute.xlu1 %1166  ;;  %2139 = vmatmul.mubr.msk.f32.vlgmr.msra.gmra.mrb[0].mxu0 %vm296_vm3, %v2136_v8  ;;  %v1161_v13 = vpop.permute.xlu0 %1160 }
  0xb2   : > { %v1171_v16 = vsel %vm1170_vm7, %v1161_v13, %v1163_v10  ;;  %1250 = vmatprep.mubr.f32.mxu0 %v2268_v0  ;;  %v1173_v24 = vsel %vm1170_vm7, %v1165_v9, %v1167_v12 }
  0xb3   : > { %2145 = vmatpush1.msk.msra.mxu0 %vm300_vm2, %v1171_v16 }
  0xb5   : > { %v1345_v17 = vpop.permute.xlu1 %1344  ;;  %v1169_v20 = vpop.permute.xlu0 %1168 }
  0xb6   : > { %v1174_v22 = vsel %vm1170_vm7, %v1167_v12, %v1169_v20 }
  0xb7   : > { %2147 = vmatprep.subr.msk.mxu1 %vm300_vm2, %v1174_v22 }
  0xb8   : > { %2148 = vmatpush1.msk.msra.mxu1 %vm300_vm2, %v1173_v24 }
  0xb9   : > { %v1343_v25 = vpop.permute.xlu1 %1342  ;;  %2146 = vmatmul.mubr.msk.f32.vlgmr.msra.gmra.mrb[0].mxu0 %vm296_vm3, %v2143_v23  ;;  %v1347_v27 = vpop.permute.xlu0 %1346  ;;  %2149 = vmatmul.mubr.msk.f32.vlgmr.msra.gmra.mrb[0].mxu1 %vm296_vm3, %v2143_v23 }
  0xba   : > { %v1353_v28 = vsel %vm1352_vm8, %v1343_v25, %v1345_v17  ;;  %v1354_v29 = vsel %vm1352_vm8, %v1345_v17, %v1347_v27  ;;  %1432 = vmatprep.mubr.f32.mxu0 %v2268_v0  ;;  %1503 = vmatprep.mubr.f32.mxu1 %v2268_v0 }
  0xbb   : > { %2151 = vmatprep.subr.msk.mxu0 %vm300_vm2, %v1354_v29 }
  0xbc   : > { %2152 = vmatpush1.msk.msra.mxu0 %vm300_vm2, %v1353_v28 }
  0xbd   : > { %v1351_v30 = vpop.permute.xlu1 %1350  ;;  %v1349_v31 = vpop.permute.xlu0 %1348 }
  0xbe   : > { %v1355_v32 = vsel %vm1352_vm8, %v1347_v27, %v1349_v31  ;;  %v1356_v33 = vsel %vm1352_vm8, %v1349_v31, %v1351_v30 }
  0xbf   : > { %2154 = vmatprep.subr.msk.mxu1 %vm300_vm2, %v1356_v33 }
  0xc0   : > { %2155 = vmatpush1.msk.msra.mxu1 %vm300_vm2, %v1355_v32 }
  0xc1   : > { %v1529_v35 = vpop.permute.xlu1 %1528  ;;  %2153 = vmatmul.mubr.msk.f32.vlgmr.msra.gmra.mrb[0].mxu0 %vm296_vm3, %v2150_v34  ;;  %v1527_v36 = vpop.permute.xlu0 %1526  ;;  %2156 = vmatmul.mubr.msk.f32.vlgmr.msra.gmra.mrb[0].mxu1 %vm296_vm3, %v2150_v34 }
  0xc2   : > { %v1536_v37 = vsel %vm1534_vm9, %v1527_v36, %v1529_v35  ;;  %1614 = vmatprep.mubr.f32.mxu0 %v2268_v0  ;;  %1685 = vmatprep.mubr.f32.mxu1 %v2268_v0 }
  0xc3   : > { %2158 = vmatprep.subr.msk.mxu0 %vm300_vm2, %v1536_v37 }
  0xc5   : > { %v1531_v38 = vpop.permute.xlu1 %1530  ;;  %v1525_v39 = vpop.permute.xlu0 %1524 }
  0xc6   : > { %v1535_v40 = vsel %vm1534_vm9, %v1525_v39, %v1527_v36  ;;  %v1537_v45 = vsel %vm1534_vm9, %v1529_v35, %v1531_v38 }
  0xc7   : > { %2159 = vmatpush1.msk.msra.mxu0 %vm300_vm2, %v1535_v40 }
  0xc9   : > { %v1709_v42 = vpop.permute.xlu1 %1708  ;;  %2160 = vmatmul.mubr.msk.f32.vlgmr.msra.gmra.mrb[0].mxu0 %vm296_vm3, %v2157_v41  ;;  %v1533_v43 = vpop.permute.xlu0 %1532 }
  0xca   : > { %v1538_v44 = vsel %vm1534_vm9, %v1531_v38, %v1533_v43  ;;  %1796 = vmatprep.mubr.f32.mxu0 %v2268_v0 }
  0xcb   : > { %2161 = vmatprep.subr.msk.mxu1 %vm300_vm2, %v1538_v44 }
  0xcc   : > { %2162 = vmatpush1.msk.msra.mxu1 %vm300_vm2, %v1537_v45 }
  0xcd   : > { %v1707_v46 = vpop.permute.xlu1 %1706  ;;  %2163 = vmatmul.mubr.msk.f32.vlgmr.msra.gmra.mrb[0].mxu1 %vm296_vm3, %v2157_v41  ;;  %v1711_v47 = vpop.permute.xlu0 %1710 }
  0xce   : > { %v1717_v48 = vsel %vm1716_vm10, %v1707_v46, %v1709_v42  ;;  %v1718_v49 = vsel %vm1716_vm10, %v1709_v42, %v1711_v47  ;;  %1867 = vmatprep.mubr.f32.mxu1 %v2268_v0 }
  0xcf   : > { %2165 = vmatprep.subr.msk.mxu0 %vm300_vm2, %v1718_v49 }
  0xd0   : > { %2166 = vmatpush1.msk.msra.mxu0 %vm300_vm2, %v1717_v48 }
  0xd1   : > { %v1715_v51 = vpop.permute.xlu1 %1714  ;;  %2167 = vmatmul.mubr.msk.f32.vlgmr.msra.gmra.mrb[0].mxu0 %vm296_vm3, %v2164_v50  ;;  %v1713_v52 = vpop.permute.xlu0 %1712 }
  0xd2   : > { %v1719_v53 = vsel %vm1716_vm10, %v1711_v47, %v1713_v52  ;;  %v1720_v54 = vsel %vm1716_vm10, %v1713_v52, %v1715_v51 }
  0xd3   : > { %2168 = vmatprep.subr.msk.mxu1 %vm300_vm2, %v1720_v54 }
  0xd4   : > { %2169 = vmatpush1.msk.msra.mxu1 %vm300_vm2, %v1719_v53 }
  0xd5   : > { %2170 = vmatmul.mubr.msk.f32.vlgmr.msra.gmra.mrb[0].mxu1 %vm296_vm3, %v2164_v50 }
 0x10b   : > { %v1913_v2 = vpop.xlane.xlu0 %1912 }
 0x10c   : > { %v1926_v3 = vrot.slane %v1913_v2, %v1886_v15 }
 0x10e   : > { %2242 = vrcp.f32 %v1926_v3 }
 0x118   : > { %v2243_v4 = vpop.eup %2242 }
 0x1a4   : > { %v1798_v0 = vpop.f32.mrb[0].mxu0 }
 0x1a5   : > { %1878 = vst [vmem:[%s262_s6] sm:$0xff] %v1798_v0  ;;  %v1914_v55 = vmul.f32 %v2393_v18, %v1798_v0  ;;  %v1800_v56 = vpop.f32.mrb[1].mxu0 }
 0x1a6   : > { %1879 = vst [vmem:[%s262_s6 + $0x8] sm:$0xff] %v1800_v56  ;;  %v1915_v57 = vmul.f32 %v2395_v19, %v1800_v56 }
 0x1a8   : > { %v1918_v58 = vadd.f32 %v1915_v57, %v1914_v55  ;;  %v1869_v59 = vpop.f32.mrb[0].mxu1 }
 0x1a9   : > { %1880 = vst [vmem:[%s262_s6 + $0x10] sm:$0xff] %v1869_v59  ;;  %v1916_v60 = vmul.f32 %v2398_v21, %v1869_v59  ;;  %v1871_v61 = vpop.f32.mrb[1].mxu1 }
 0x1aa   : > { %1881 = vst [vmem:[%s262_s6 + $0x18] sm:$0xff] %v1871_v61  ;;  %v1917_v62 = vmul.f32 %v2403_v26, %v1871_v61 }
 0x1ab   : > { %v1919_v63 = vadd.f32 %v1918_v58, %v1916_v60 }
 0x1ad   : > { %v1920_v1 = vadd.f32 %v1919_v63, %v1917_v62 }
 0x1af   : > { %1921 = vadd.xlane.f32.xlu1 %v1920_v1 }
 0x23c   : > { %v1922_v5 = vpop.xlane.xlu1 %1921 }
 0x23d   : > { %v1928_v6 = vmul.f32 %v2243_v4, %v1922_v5 }
 0x23f   : > { %v1929_v7 = vsub.f32 %v1798_v0, %v1928_v6  ;;  %v1930_v8 = vsub.f32 %v1800_v56, %v1928_v6  ;;  %v1931_v9 = vsub.f32 %v1869_v59, %v1928_v6  ;;  %v1932_v10 = vsub.f32 %v1871_v61, %v1928_v6 }
 0x241   : > { %v1933_v11 = vmul.f32 %v1929_v7, %v2393_v18  ;;  %v1934_v12 = vmul.f32 %v1930_v8, %v2395_v19  ;;  %v1935_v13 = vmul.f32 %v1931_v9, %v2398_v21  ;;  %v1936_v16 = vmul.f32 %v1932_v10, %v2403_v26 }
 0x243   : > { %v1937_v17 = vmul.f32 %v1933_v11, %v1933_v11  ;;  %v1938_v14 = vmul.f32 %v1934_v12, %v1934_v12  ;;  %v1939_v15 = vmul.f32 %v1935_v13, %v1935_v13  ;;  %v1940_v22 = vmul.f32 %v1936_v16, %v1936_v16 }
 0x245   : > { %v1941_v20 = vadd.f32 %v1938_v14, %v1937_v17 }
 0x247   : > { %v1942_v23 = vadd.f32 %v1941_v20, %v1939_v15 }
 0x249   : > { %v1943_v24 = vadd.f32 %v1942_v23, %v1940_v22 }
 0x24b   : > { %1944 = vadd.xlane.f32.xlu0 %v1943_v24 }
 0x2d8   : > { %v1945_v18 = vpop.xlane.xlu0 %1944 }
 0x2d9   : > { %v1947_v19 = vsel %vm1946_vm11, %v1922_v5, %v1945_v18 }
 0x2da   : > { %1949 = vst.msk [vmem:[%s269_s10] sm:$0xff] %vm1948_vm12, %v1947_v19 }
 0x2db PF: > { %s15_s17 = sadd.s32 1, %s2266_s17   ;;  %s2556_s15 = smov %s2262_s16 }
 0x2dc   : > { %p12_p5 = scmp.ge.s32.totalorder %s15_s17, 4   ;;  %s2557_s16 = smov %s2559_s18 }
 0x2de   :  { %14 = sbr.rel (!%p12_p5) target bundleno = 2 (0x2), region = 85 }

</bundles_post_ra>
